<compile_context>
chip_gen: v5e
topology: v5e:2x2
jax: 0.10.0
libtpu: 0.0.40
codegen_flags: <defaults>
</compile_context>

<pallas_src>
import jax
import jax.numpy as jnp
from jax.experimental import pallas as pl
from jax.experimental.pallas import tpu as pltpu

_PALLAS_MIN_ELEMENTS = 8192            # below this, pure-JAX (fused by XLA) wins
_DEFAULT_BLOCK_BYTES = 2 * 1024 * 1024  # ~2 MiB of logits per grid step


def _cdiv(a, b):
    return -(-a // b)


def _round_up(a, m):
    return _cdiv(a, m) * m


def _collapse_to_2d(shape):
    """Collapse trailing dims of a contiguous array into (rows, lane) with
    lane >= 128 when possible.  Metadata-only: the later reshape is free."""
    lane = 1
    k = len(shape)
    while k > 0 and lane < 128:
        k -= 1
        lane *= shape[k]
    rows = 1
    for d in shape[:k]:
        rows *= d
    return max(rows, 1), max(lane, 1)


def _make_partials_kernel(rows, tr, needs_mask):
    """Reduce one (tr, lane) tile to 4 scalars, written into an (8,128) tile.

    Output tile rows (broadcast across lanes):
      0: pos_num   1: neg_num   2: sum(bce | t==1)   3: sum(bce | t==0)
    Counts/sums accumulate in f32 (exact counts up to 2^24 per block — far
    beyond SiamFC response-map sizes).
    """

    def kernel(x_ref, t_ref, o_ref):
        x = x_ref[...].astype(jnp.float32)
        t = t_ref[...].astype(jnp.float32)

        pos = t == 1.0
        neg = t == 0.0
        # Any other target value (e.g. "ignore") matches neither mask -> weight 0,
        # exactly like the PyTorch module.

        if needs_mask:
            # Last grid block extends past `rows`; out-of-bounds rows carry
            # unspecified data, so mask them (and zero x so softplus(garbage)
            # can't inject Inf/NaN into the masked products).
            i = pl.program_id(0)
            valid = jnp.minimum(rows - i * tr, tr)
            row_ok = jax.lax.broadcasted_iota(jnp.int32, x.shape, 0) < valid
            pos = jnp.logical_and(pos, row_ok)
            neg = jnp.logical_and(neg, row_ok)
            x = jnp.where(row_ok, x, 0.0)

        pos_f = pos.astype(jnp.float32)
        neg_f = neg.astype(jnp.float32)

        # Numerically stable softplus(x) = max(x,0) + log1p(exp(-|x|)).
        # exp/log1p ride the EUP slot (free relative to VALU).
        sp = jnp.maximum(x, 0.0) + jnp.log1p(jnp.exp(-jnp.abs(x)))

        pos_num = jnp.sum(pos_f)
        neg_num = jnp.sum(neg_f)
        pos_sum = jnp.sum(pos_f * (sp - x))   # bce | t==1 : softplus(x) - x
        neg_sum = jnp.sum(neg_f * sp)         # bce | t==0 : softplus(x)

        sub = jax.lax.broadcasted_iota(jnp.int32, (8, 128), 0)
        tile = jnp.where(sub == 0, pos_num, 0.0)
        tile = jnp.where(sub == 1, neg_num, tile)
        tile = jnp.where(sub == 2, pos_sum, tile)
        tile = jnp.where(sub == 3, neg_sum, tile)
        o_ref[0] = tile

    return kernel


def _reference_balanced_loss(logits, target, neg_weight=1.0):
    """Pure-JAX reference mirroring the PyTorch module (also the small-input path)."""
    x = logits.astype(jnp.float32)
    t = target.astype(jnp.float32)
    pos_mask = t == 1.0
    neg_mask = t == 0.0
    pos_num = jnp.sum(pos_mask).astype(jnp.float32)
    neg_num = jnp.sum(neg_mask).astype(jnp.float32)
    w = jnp.where(pos_mask, 1.0 / pos_num, 0.0)
    w = jnp.where(neg_mask, neg_weight / neg_num, w)
    w = w / jnp.sum(w)
    bce = jnp.maximum(x, 0.0) - x * t + jnp.log1p(jnp.exp(-jnp.abs(x)))
    return jnp.sum(w * bce)


def _balanced_loss_pallas(logits, target, neg_weight=1.0,
                          block_bytes=_DEFAULT_BLOCK_BYTES):
    """Pallas streaming-reduction path.  Returns a scalar f32 loss."""
    assert logits.shape == target.shape
    rows, lane = _collapse_to_2d(logits.shape)

    if lane * logits.dtype.itemsize > 8 * block_bytes:
        # TODO(synk): add lane-axis tiling for extremely wide trailing dims.
        return _reference_balanced_loss(logits, target, neg_weight)

    # Metadata-only reshapes (contiguous arrays): no HBM copies, no padding,
    # and targets stream in their native dtype (no wrapper-side cast pass).
    x2d = logits.reshape(rows, lane)
    t2d = target.reshape(rows, lane)

    bytes_per_row = lane * logits.dtype.itemsize
    target_rows = max(8, (block_bytes // bytes_per_row) // 8 * 8)
    if rows <= target_rows:
        tr = rows                          # single block; full-dim rows allowed
    else:
        nb = _cdiv(rows, target_rows)
        tr = _round_up(_cdiv(rows, nb), 8)  # balanced tiles -> minimal ragged tail
    num_blocks = _cdiv(rows, tr)
    needs_mask = (rows % tr) != 0

    out = pl.pallas_call(
        _make_partials_kernel(rows, tr, needs_mask),
        out_shape=jax.ShapeDtypeStruct((num_blocks, 8, 128), jnp.float32),
        grid_spec=pltpu.PrefetchScalarGridSpec(
            num_scalar_prefetch=0,
            grid=(num_blocks,),
            in_specs=[
                pl.BlockSpec((tr, lane), lambda i: (i, 0)),
                pl.BlockSpec((tr, lane), lambda i: (i, 0)),
            ],
            out_specs=pl.BlockSpec((1, 8, 128), lambda i: (i, 0, 0)),
        ),
        compiler_params=pltpu.CompilerParams(
            # TODO(synk): on v7x verify both TensorCores stream with "parallel";
            # if not, switch the leading axis to pltpu.CORE_PARALLEL.
            dimension_semantics=("parallel",),
            vmem_limit_bytes=48 * 1024 * 1024,
        ),
    )(x2d, t2d)

    # Final weighted normalization on 4 scalars (cheap; fused by XLA).
    partials = jnp.sum(out[:, :4, 0], axis=0)
    pos_num, neg_num = partials[0], partials[1]
    pos_sum, neg_sum = partials[2], partials[3]
    nw = jnp.asarray(neg_weight, jnp.float32)

    pos_term = jnp.where(pos_num > 0, pos_sum / pos_num, 0.0)
    neg_term = jnp.where(neg_num > 0, nw * neg_sum / neg_num, 0.0)
    sum_w = jnp.where(pos_num > 0, 1.0, 0.0) + jnp.where(neg_num > 0, nw, 0.0)
    # Guard the degenerate "no 0/1 labels at all" case (PyTorch would emit NaN).
    return jnp.where(sum_w > 0, (pos_term + neg_term) / sum_w, 0.0)


def balanced_loss(logits, target, neg_weight=1.0):
    """Public entry: tiny inputs go to the fused XLA path, large ones to Pallas."""
    if logits.size < _PALLAS_MIN_ELEMENTS:
        return _reference_balanced_loss(logits, target, neg_weight)
    return _balanced_loss_pallas(logits, target, neg_weight)


if __name__ == "__main__":
    key = jax.random.PRNGKey(0)

    cases = [
        # (shape NCHW, neg_weight, logits dtype, block_bytes override)
        ((2, 1, 16, 16), 1.0, jnp.float32, _DEFAULT_BLOCK_BYTES),    # tiny, single block
        ((8, 1, 64, 64), 0.5, jnp.float32, _DEFAULT_BLOCK_BYTES),    # collapsed lane dim
        ((4, 1, 255, 255), 1.0, jnp.bfloat16, _DEFAULT_BLOCK_BYTES),  # bf16 stream
        ((4, 1, 255, 255), 2.0, jnp.float32, 64 * 1024),             # multi-block + ragged tail mask
    ]

    ok = True
    for idx, (shape, nw, dt, bb) in enumerate(cases):
        k1, k2, key = jax.random.split(key, 3)
        logits = jax.random.normal(k1, shape, dtype=jnp.float32).astype(dt)
        target = (jax.random.uniform(k2, shape) < 0.2).astype(jnp.float32)

        loss = _balanced_loss_pallas(logits, target, nw, block_bytes=bb)  # force Pallas
        loss = jax.block_until_ready(loss)
        ref = _reference_balanced_loss(logits, target, nw)
        ref = jax.block_until_ready(ref)

        # f32 reductions with different summation orders over up to ~2.6e5
        # elements: allow ~5e-4 relative slack.
        if not jnp.allclose(loss, ref, rtol=5e-4, atol=1e-6):
            ok = False
            print(f"MISMATCH case {idx}: pallas={loss} ref={ref}")

    # Also exercise the public dispatcher once.
    _ = jax.block_until_ready(balanced_loss(
        jnp.zeros((2, 1, 16, 16), jnp.float32),
        jnp.zeros((2, 1, 16, 16), jnp.float32)))

    if ok:
        print("KERNEL_OK")
</pallas_src>

<mosaic_0001>
module attributes {stable_mosaic.version = 11 : i64} {
  func.func @kernel(%arg0: i32, %arg1: memref<2x256xf32, #tpu.memory_space<vmem>>, %arg2: memref<2x256xf32, #tpu.memory_space<vmem>>, %arg3: memref<1x8x128xf32, #tpu.memory_space<vmem>>) attributes {dimension_semantics = [#tpu.dimension_semantics<parallel>], iteration_bounds = array<i64: 1>, scalar_prefetch = 0 : i64, scratch_operands = 0 : i64, tpu.core_type = #tpu.core_type<tc>, window_params = [{transform_indices = @transform_0, window_bounds = array<i64: 2, 256>}, {transform_indices = @transform_1, window_bounds = array<i64: 2, 256>}, {transform_indices = @transform_2, window_bounds = array<i64: 1, 8, 128>}]} {
    %c0 = arith.constant 0 : index
    %c0_0 = arith.constant 0 : index
    %0 = vector.load %arg1[%c0, %c0_0] : memref<2x256xf32, #tpu.memory_space<vmem>>, vector<2x256xf32>
    %c0_1 = arith.constant 0 : index
    %c0_2 = arith.constant 0 : index
    %1 = vector.load %arg2[%c0_1, %c0_2] : memref<2x256xf32, #tpu.memory_space<vmem>>, vector<2x256xf32>
    %cst = arith.constant 1.000000e+00 : f32
    %2 = vector.broadcast %cst : f32 to vector<2x256xf32>
    %3 = arith.cmpf oeq, %1, %2 : vector<2x256xf32>
    %cst_3 = arith.constant 0.000000e+00 : f32
    %4 = vector.broadcast %cst_3 : f32 to vector<2x256xf32>
    %5 = arith.cmpf oeq, %1, %4 : vector<2x256xf32>
    %6 = arith.extui %3 : vector<2x256xi1> to vector<2x256xi32>
    %7 = arith.sitofp %6 : vector<2x256xi32> to vector<2x256xf32>
    %8 = arith.extui %5 : vector<2x256xi1> to vector<2x256xi32>
    %9 = arith.sitofp %8 : vector<2x256xi32> to vector<2x256xf32>
    %cst_4 = arith.constant 0.000000e+00 : f32
    %10 = vector.broadcast %cst_4 : f32 to vector<2x256xf32>
    %11 = arith.maximumf %0, %10 : vector<2x256xf32>
    %12 = math.absf %0 : vector<2x256xf32>
    %cst_5 = arith.constant 0.000000e+00 : f32
    %13 = vector.broadcast %cst_5 : f32 to vector<2x256xf32>
    %14 = arith.subf %13, %12 : vector<2x256xf32>
    %15 = math.exp %14 : vector<2x256xf32>
    %16 = math.log1p %15 : vector<2x256xf32>
    %17 = arith.addf %11, %16 : vector<2x256xf32>
    %18 = vector.shape_cast %7 : vector<2x256xf32> to vector<1x2x256xf32>
    %cst_6 = arith.constant dense<0.000000e+00> : vector<1xf32>
    %19 = vector.multi_reduction <add>, %18, %cst_6 [1, 2] : vector<1x2x256xf32> to vector<1xf32>
    %20 = vector.shape_cast %19 : vector<1xf32> to vector<1x1x1xf32>
    %21 = vector.extract %20[0, 0, 0] : f32 from vector<1x1x1xf32>
    %22 = vector.shape_cast %9 : vector<2x256xf32> to vector<1x2x256xf32>
    %cst_7 = arith.constant dense<0.000000e+00> : vector<1xf32>
    %23 = vector.multi_reduction <add>, %22, %cst_7 [1, 2] : vector<1x2x256xf32> to vector<1xf32>
    %24 = vector.shape_cast %23 : vector<1xf32> to vector<1x1x1xf32>
    %25 = vector.extract %24[0, 0, 0] : f32 from vector<1x1x1xf32>
    %26 = arith.subf %17, %0 : vector<2x256xf32>
    %27 = arith.mulf %7, %26 : vector<2x256xf32>
    %28 = vector.shape_cast %27 : vector<2x256xf32> to vector<1x2x256xf32>
    %cst_8 = arith.constant dense<0.000000e+00> : vector<1xf32>
    %29 = vector.multi_reduction <add>, %28, %cst_8 [1, 2] : vector<1x2x256xf32> to vector<1xf32>
    %30 = vector.shape_cast %29 : vector<1xf32> to vector<1x1x1xf32>
    %31 = vector.extract %30[0, 0, 0] : f32 from vector<1x1x1xf32>
    %32 = arith.mulf %9, %17 : vector<2x256xf32>
    %33 = vector.shape_cast %32 : vector<2x256xf32> to vector<1x2x256xf32>
    %cst_9 = arith.constant dense<0.000000e+00> : vector<1xf32>
    %34 = vector.multi_reduction <add>, %33, %cst_9 [1, 2] : vector<1x2x256xf32> to vector<1xf32>
    %35 = vector.shape_cast %34 : vector<1xf32> to vector<1x1x1xf32>
    %36 = vector.extract %35[0, 0, 0] : f32 from vector<1x1x1xf32>
    %37 = tpu.iota {dimensions = array<i32: 0>} : vector<8x128xi32>
    %c0_i32 = arith.constant 0 : i32
    %38 = vector.broadcast %c0_i32 : i32 to vector<8x128xi32>
    %39 = arith.cmpi eq, %37, %38 : vector<8x128xi32>
    %cst_10 = arith.constant 0.000000e+00 : f32
    %40 = vector.broadcast %21 : f32 to vector<8x128xf32>
    %41 = vector.broadcast %cst_10 : f32 to vector<8x128xf32>
    %42 = arith.select %39, %40, %41 : vector<8x128xi1>, vector<8x128xf32>
    %c1_i32 = arith.constant 1 : i32
    %43 = vector.broadcast %c1_i32 : i32 to vector<8x128xi32>
    %44 = arith.cmpi eq, %37, %43 : vector<8x128xi32>
    %45 = vector.broadcast %25 : f32 to vector<8x128xf32>
    %46 = arith.select %44, %45, %42 : vector<8x128xi1>, vector<8x128xf32>
    %c2_i32 = arith.constant 2 : i32
    %47 = vector.broadcast %c2_i32 : i32 to vector<8x128xi32>
    %48 = arith.cmpi eq, %37, %47 : vector<8x128xi32>
    %49 = vector.broadcast %31 : f32 to vector<8x128xf32>
    %50 = arith.select %48, %49, %46 : vector<8x128xi1>, vector<8x128xf32>
    %c3_i32 = arith.constant 3 : i32
    %51 = vector.broadcast %c3_i32 : i32 to vector<8x128xi32>
    %52 = arith.cmpi eq, %37, %51 : vector<8x128xi32>
    %53 = vector.broadcast %36 : f32 to vector<8x128xf32>
    %54 = arith.select %52, %53, %50 : vector<8x128xi1>, vector<8x128xf32>
    %c0_11 = arith.constant 0 : index
    %c0_12 = arith.constant 0 : index
    %c0_13 = arith.constant 0 : index
    %55 = vector.load %arg3[%c0_11, %c0_12, %c0_13] : memref<1x8x128xf32, #tpu.memory_space<vmem>>, vector<1x8x128xf32>
    %56 = vector.shape_cast %55 : vector<1x8x128xf32> to vector<8x128xf32>
    %57 = vector.shape_cast %54 : vector<8x128xf32> to vector<1x8x128xf32>
    tpu.vector_store %arg3[%c0_11, %c0_12, %c0_13], %57 {strides = array<i32>} : memref<1x8x128xf32, #tpu.memory_space<vmem>>, vector<1x8x128xf32>,
    return
  }
  func.func @transform_0(%arg0: i32) -> (i32, i32) {
    %c0_i32 = arith.constant 0 : i32
    %c0_i32_0 = arith.constant 0 : i32
    return %arg0, %c0_i32 : i32, i32
  }
  func.func @transform_1(%arg0: i32) -> (i32, i32) {
    %c0_i32 = arith.constant 0 : i32
    %c0_i32_0 = arith.constant 0 : i32
    return %arg0, %c0_i32 : i32, i32
  }
  func.func @transform_2(%arg0: i32) -> (i32, i32, i32) {
    %c0_i32 = arith.constant 0 : i32
    %c0_i32_0 = arith.constant 0 : i32
    %c0_i32_1 = arith.constant 0 : i32
    return %arg0, %c0_i32, %c0_i32_0 : i32, i32, i32
  }
}

</mosaic_0001>

<bundles_post_ra>
// kernel: tpu_custom_call.1
= control target key start
LH: loop header
LB: loop body
LE: loop exit
PB: predicated region body
PF: predicated region fallthrough
CT: control target
= control target key end

     0   :  { %7 = vsyncpa [#allocation3], 0  ;;  %s304_s0 = inlined_call_operand.hbm [shape: f32[2,256], index: 0, kind: input, shape index: {}]   ;;  %s305_s1 = inlined_call_operand.hbm [shape: f32[2,256], index: 1, kind: input, shape index: {}]   ;;  %s306_s2 = inlined_call_operand.hbm [shape: f32[1,8,128], index: 2, kind: output, shape index: {}]  }
   0x1   :  { %8 = vsyncpa [#allocation6], 0 }
   0x2   :  { %9 = vsyncpa [#allocation4], 0  ;;  %s15_s11 = sshll.u32 %s304_s0, 4  ;;  %s268_s12 = smov [#allocation2]   ;;  %s16_s11 = int_to_ptr.hbm [resolvable:$true] %s15_s11 }
   0x3   :  { %s17_s13 = sshll.u32 %s268_s12, 4  ;;  %s26_s16 = sshll.u32 %s305_s1, 4  ;;  %s18_s13 = int_to_ptr.vmem [resolvable:$true] %s17_s13  ;;  %s27_s16 = int_to_ptr.hbm [resolvable:$true] %s26_s16 }
   0x4   :  { %20 = dma.hbm_to_vmem [thread:$0]  %s16_s11, 64, %s18_s13, [#allocation3]  }
   0x5   :  { %s269_s17 = smov [#allocation5]  }
   0x6   :  { %s28_s18 = sshll.u32 %s269_s17, 4  ;;  %s29_s18 = int_to_ptr.vmem [resolvable:$true] %s28_s18 }
   0x7   :  { %31 = dma.hbm_to_vmem [thread:$0]  %s27_s16, 64, %s29_s18, [#allocation6]  }
   0x8   :  { %262 = dma.done.wait [#allocation3], 64  }
   0x9   :  { %263 = vsyncadd [#allocation3], 4294967232 }
   0xa   :  { %264 = dma.done.wait [#allocation6], 64  }
   0xb   :  { %265 = vsyncadd [#allocation6], 4294967232  ;;  %v41_v0 = vld [vmem:[#allocation5] sm:$0xf]  ;;  %v40_v1 = vld [vmem:[#allocation2] sm:$0xf] }
   0xc   :  { %vm42_vm0 = vcmp.eq.f32.partialorder %v41_v0, 1.0  ;;  %v49_v2 = vand.u32 2147483647, %v40_v1  ;;  %v270_v3 = vmov 0.0   ;;  %vm43_vm1 = vcmp.eq.f32.partialorder %v41_v0, 0.0  ;;  %s271_s20 = smov [#allocation7]  }
   0xd   :  { %v172_v4 = vsel %vm42_vm0, 1.0, %v270_v3  ;;  %v173_v7 = vsel %vm43_vm1, 1.0, %v270_v3  ;;  %vm69_vm2 = vcmask 1041408   ;;  %v48_v25 = vmax.f32 %v40_v1, 0.0  ;;  %s159_s21 = sshll.u32 %s271_s20, 4  ;;  %s161_s24 = sshll.u32 %s306_s2, 4  ;;  %s160_s21 = int_to_ptr.vmem [resolvable:$true] %s159_s21  ;;  %s162_s24 = int_to_ptr.hbm [resolvable:$true] %s161_s24 }
   0xe   :  { %64 = vst [vmem:[#allocation1] ss:$4 sm:$0xff] %v172_v4  ;;  %v50_v5 = vsub.f32 0.0, %v49_v2 }
  0x10   :  { %v51_v6 = vmul.f32 1.442695, %v50_v5 }
  0x12   :  { %186 = vpow2.f32 %v51_v6  ;;  %v139_v6 = vlaneseq }
  0x15   :  { %v65_v8 = vld.sshfl [vmem:[#allocation1] sm:$0xff pattern:$0x73625140]  ;;  %v66_v9 = vld.sshfl [vmem:[#allocation1 + $0x8] sm:$0xff pattern:$0x73625140] }
  0x16   :  { %v70_v10 = vsel %vm69_vm2, %v65_v8, 0.0  ;;  %v71_v11 = vsel %vm69_vm2, %v66_v9, 0.0  ;;  %83 = vst [vmem:[#allocation1] ss:$4 sm:$0xff] %v173_v7 }
  0x17   :  { %v72_v12 = vadd.f32 %v71_v11, %v70_v10 }
  0x18   :  { %v187_v13 = vpop.eup %186 }
  0x19   :  { %73 = vadd.xlane.f32.xlu0 %v72_v12  ;;  %v53_v14 = vadd.f32 1.0, %v187_v13  ;;  %v56_v15 = vmul.f32 -0.5, %v187_v13  ;;  %v59_v17 = vand.u32 2147483647, %v187_v13 }
  0x1b   :  { %188 = vlog2.f32 %v53_v14  ;;  %v57_v16 = vadd.f32 1.0, %v56_v15  ;;  %vm60_vm3 = vcmp.lt.f32.partialorder %v59_v17, 0.0004427343 }
  0x1d   :  { %v84_v18 = vld.sshfl [vmem:[#allocation1] sm:$0xff pattern:$0x73625140]  ;;  %v85_v19 = vld.sshfl [vmem:[#allocation1 + $0x8] sm:$0xff pattern:$0x73625140]  ;;  %v58_v23 = vmul.f32 %v187_v13, %v57_v16 }
  0x1e   :  { %v88_v20 = vsel %vm69_vm2, %v84_v18, 0.0  ;;  %v89_v21 = vsel %vm69_vm2, %v85_v19, 0.0 }
  0x1f   :  { %v90_v22 = vadd.f32 %v89_v21, %v88_v20 }
  0x21   :  { %v189_v24 = vpop.eup %188  ;;  %91 = vadd.xlane.f32.xlu0 %v90_v22 }
  0x22   :  { %v55_v26 = vmul.f32 0.6931472, %v189_v24 }
  0x24   :  { %v61_v27 = vsel %vm60_vm3, %v58_v23, %v55_v26 }
  0x25   :  { %v62_v28 = vadd.f32 %v61_v27, %v48_v25 }
  0x27   :  { %v100_v29 = vsub.f32 %v62_v28, %v40_v1  ;;  %v120_v31 = vmul.f32 %v173_v7, %v62_v28  ;;  %v140_v7 = vshrl.u32 %v139_v6, 7 }
  0x29   :  { %v101_v30 = vmul.f32 %v172_v4, %v100_v29  ;;  %vm141_vm4 = vcmp.eq.s32.totalorder %v140_v7, 0  ;;  %vm144_vm5 = vcmp.eq.s32.totalorder %v140_v7, 1  ;;  %vm147_vm6 = vcmp.eq.s32.totalorder %v140_v7, 2 }
  0x2a   :  { %vm150_vm7 = vcmp.eq.s32.totalorder %v140_v7, 3 }
  0x2b   :  { %103 = vst [vmem:[#allocation1] ss:$4 sm:$0xff] %v101_v30 }
  0x32   :  { %v104_v32 = vld.sshfl [vmem:[#allocation1] sm:$0xff pattern:$0x73625140]  ;;  %v105_v33 = vld.sshfl [vmem:[#allocation1 + $0x8] sm:$0xff pattern:$0x73625140] }
  0x33   :  { %v108_v34 = vsel %vm69_vm2, %v104_v32, 0.0  ;;  %v109_v35 = vsel %vm69_vm2, %v105_v33, 0.0  ;;  %122 = vst [vmem:[#allocation1] ss:$4 sm:$0xff] %v120_v31 }
  0x34   :  { %v110_v36 = vadd.f32 %v109_v35, %v108_v34 }
  0x36   :  { %111 = vadd.xlane.f32.xlu1 %v110_v36 }
  0x3a   :  { %v123_v37 = vld.sshfl [vmem:[#allocation1] sm:$0xff pattern:$0x73625140]  ;;  %v124_v38 = vld.sshfl [vmem:[#allocation1 + $0x8] sm:$0xff pattern:$0x73625140] }
  0x3b   :  { %v127_v39 = vsel %vm69_vm2, %v123_v37, 0.0  ;;  %v128_v40 = vsel %vm69_vm2, %v124_v38, 0.0 }
  0x3c   :  { %v129_v41 = vadd.f32 %v128_v40, %v127_v39 }
  0x3e   :  { %130 = vadd.xlane.f32.xlu1 %v129_v41 }
  0x8c   :  { %v74_v42 = vpop.xlane.xlu0 %73 }
  0x8d   :  { %v75_v43 = vrot.slane %v74_v42, 4 }
  0x8f   :  { %v76_v44 = vadd.f32 %v75_v43, %v74_v42 }
  0x91   :  { %v77_v45 = vrot.slane %v76_v44, 2 }
  0x93   :  { %v78_v46 = vadd.f32 %v77_v45, %v76_v44 }
  0x94   :  { %v92_v47 = vpop.xlane.xlu0 %91 }
  0x95   :  { %v93_v48 = vrot.slane %v92_v47, 4  ;;  %v79_v49 = vrot.slane %v78_v46, 1 }
  0x97   :  { %v94_v50 = vadd.f32 %v93_v48, %v92_v47  ;;  %v80_v51 = vadd.f32 %v79_v49, %v78_v46 }
  0x99   :  { %v95_v52 = vrot.slane %v94_v50, 2  ;;  %174 = vpush %v80_v51 }
  0x9b   :  { %v96_v53 = vadd.f32 %v95_v52, %v94_v50 }
  0x9d   :  { %v97_v54 = vrot.slane %v96_v53, 1 }
  0x9f   :  { %v98_v55 = vadd.f32 %v97_v54, %v96_v53 }
  0xa1   :  { %176 = vpush %v98_v55 }
  0xa9   :  { %v112_v56 = vpop.xlane.xlu1 %111 }
  0xaa   :  { %v113_v57 = vrot.slane %v112_v56, 4 }
  0xac   :  { %v114_v58 = vadd.f32 %v113_v57, %v112_v56 }
  0xae   :  { %v115_v59 = vrot.slane %v114_v58, 2 }
  0xb0   :  { %v116_v60 = vadd.f32 %v115_v59, %v114_v58 }
  0xb1   :  { %v131_v61 = vpop.xlane.xlu1 %130 }
  0xb2   :  { %v132_v62 = vrot.slane %v131_v61, 4  ;;  %v117_v63 = vrot.slane %v116_v60, 1 }
  0xb4   :  { %v133_v0 = vadd.f32 %v132_v62, %v131_v61  ;;  %v118_v1 = vadd.f32 %v117_v63, %v116_v60 }
  0xb6   :  { %v134_v2 = vrot.slane %v133_v0, 2  ;;  %178 = vpush %v118_v1 }
  0xb8   :  { %v135_v3 = vadd.f32 %v134_v2, %v133_v0 }
  0xba   :  { %v136_v4 = vrot.slane %v135_v3, 1 }
  0xbc   :  { %v137_v5 = vadd.f32 %v136_v4, %v135_v3 }
  0xbe   :  { %180 = vpush %v137_v5 }
  0xca   :  { %s175_s0 = spop %174 }
  0xcb   :  { %v142_v8 = vstv %s175_s0 }
  0xcc   :  { %v143_v9 = vsel %vm141_vm4, %v142_v8, 0.0 }
  0xd2   :  { %s177_s1 = spop %176 }
  0xd3   :  { %v145_v10 = vstv %s177_s1 }
  0xd4   :  { %v146_v12 = vsel %vm144_vm5, %v145_v10, %v143_v9 }
  0xe7   :  { %s179_s19 = spop %178 }
  0xe8   :  { %v148_v11 = vstv %s179_s19 }
  0xe9   :  { %v149_v13 = vsel %vm147_vm6, %v148_v11, %v146_v12 }
  0xef   :  { %s181_s25 = spop %180 }
  0xf0   :  { %v151_v14 = vstv %s181_s25 }
  0xf1   :  { %v152_v15 = vsel %vm150_vm7, %v151_v14, %v149_v13 }
  0xf2   :  { %153 = vst [vmem:[#allocation7] sm:$0xff] %v152_v15 }
  0xf3   :  { %164 = dma.vmem_to_hbm [thread:$0]  %s160_s21, 128, %s162_s24, [#allocation4]  }
  0xf4   :  { %266 = dma.done.wait [#allocation4], 128  }
  0xf5   :  { %267 = vsyncadd [#allocation4], 4294967168 }
  0xf6   :  { %169 = vsyncpa [#allocation3], 1 }
  0xf7   :  { %170 = vsyncpa [#allocation6], 1 }
  0xf8   :  { %171 = vsyncpa [#allocation4], 1 }

</bundles_post_ra>
